<compile_context>
chip_gen: v7x
topology: tpu7x:2x2x1
jax: 0.10.0
libtpu: 0.0.40
codegen_flags: <defaults>
</compile_context>

<pallas_src>
import functools

import jax
import jax.numpy as jnp
from jax.experimental import pallas as pl
from jax.experimental.pallas import tpu as pltpu


def _round_up(x, m):
    return ((x + m - 1) // m) * m


def _cdiv(a, b):
    return -(-a // b)


def _guess_num_tensorcores():
    """Best-effort TensorCore count (drives the reduce-path partial split)."""
    try:
        info = pltpu.get_tpu_info()
        for name in ("num_cores", "core_count", "num_tensorcores",
                     "tensorcore_count"):
            v = getattr(info, name, None)
            if isinstance(v, int) and v >= 1:
                return v
    except Exception:
        pass
    try:
        kind = jax.devices()[0].device_kind.lower()
        if "v5 lite" in kind or "v5e" in kind or "v6" in kind:
            return 1
    except Exception:
        pass
    # Unknown: assume 2.  With the clamped-index + in-kernel-mask design a
    # spare partial on a single-core chip costs at most one skipped
    # (duplicate) block DMA plus one masked block of VPU work.
    return 2


def _focal_elementwise(p, t, gamma, alpha, binary_targets):
    """Per-element focal loss in f32 (matches the torch math)."""
    p = p.astype(jnp.float32)
    t = t.astype(jnp.float32)
    if binary_targets:
        # Fast path for hard {0,1} targets: 1 transcendental / element.
        # BCE = -log(p_t) with p_t = p if t==1 else 1-p; pt = p_t up to the
        # -100 clamp (difference < 4e-44, irrelevant for (1-pt)**gamma).
        p_t = jnp.where(t > 0.5, p, 1.0 - p)
        bce = -jnp.maximum(jnp.log(p_t), -100.0)
        one_minus_pt = 1.0 - p_t
    else:
        # Exact torch semantics (soft targets): BCELoss clamps logs at -100.
        log_p = jnp.maximum(jnp.log(p), -100.0)
        log_1mp = jnp.maximum(jnp.log(1.0 - p), -100.0)
        bce = -(t * log_p + (1.0 - t) * log_1mp)
        one_minus_pt = 1.0 - jnp.exp(-bce)

    g = float(gamma)
    if g == int(g) and 0 <= int(g) <= 8:
        # Small integer gamma: repeated VPU multiplies instead of jnp.power
        # (which would lower to log+exp on the single-slot EUP).
        gi = int(g)
        if gi == 0:
            mod = jnp.ones_like(one_minus_pt)
        else:
            mod = one_minus_pt
            for _ in range(gi - 1):
                mod = mod * one_minus_pt
    else:
        mod = jnp.power(one_minus_pt, jnp.float32(g))

    focal = mod * bce
    if alpha is not None:
        focal = jnp.float32(alpha) * focal
    return focal


def _focal_reduce_kernel(x_ref, t_ref, out_ref, acc_ref, *, gamma, alpha,
                         binary_targets, inner, valid_rows, need_mask):
    """Grid (P, inner); accumulates an (8, lanes) partial-sum slab per P."""
    i = pl.program_id(1)

    @pl.when(i == 0)
    def _():
        acc_ref[...] = jnp.zeros_like(acc_ref)

    focal = _focal_elementwise(x_ref[...], t_ref[...], gamma, alpha,
                               binary_targets)
    rows, lanes = focal.shape
    if need_mask:
        # Mask rows beyond the (static) valid row count: handles the ragged
        # last block and any clamped duplicate block of the last partial.
        row0 = (pl.program_id(0) * inner + i) * rows
        rid = jax.lax.broadcasted_iota(jnp.int32, (rows, lanes), 0) + row0
        focal = jnp.where(rid < valid_rows, focal, 0.0)
    # Fold the (rows, lanes) tile onto the (8, lanes) accumulator with pure
    # VPU adds; the reshape splits the sublane axis at an 8-row tile
    # boundary, so it is layout-free.
    acc_ref[...] += focal.reshape(rows // 8, 8, lanes).sum(axis=0)

    @pl.when(i == pl.num_programs(1) - 1)
    def _():
        out_ref[...] = acc_ref[...]


def _focal_none_kernel(x_ref, t_ref, out_ref, *, gamma, alpha, binary_targets):
    out_ref[...] = _focal_elementwise(x_ref[...], t_ref[...], gamma, alpha,
                                      binary_targets).astype(out_ref.dtype)


def focal_loss(inputs, targets, gamma=2.0, alpha=None, reduction='mean', *,
               binary_targets=False, lanes=None, max_block_rows=None,
               target_block_bytes=4 << 20):
    """Pallas TPU focal loss.

    inputs/targets: probabilities / labels of identical (arbitrary) shape.
    binary_targets=True enables the 1-transcendental fast path (targets must
    be hard {0,1} labels).  lanes (multiple of 128) and max_block_rows are
    optional overrides; by default lanes is chosen so the flatten/reshape is
    copy-free and blocks target ~target_block_bytes per input.
    """
    assert inputs.shape == targets.shape
    if reduction not in ('mean', 'sum', 'none'):
        raise ValueError(f"unknown reduction: {reduction}")

    total = int(inputs.size)
    in_itemsize = jnp.dtype(inputs.dtype).itemsize

    if lanes is None:
        lanes = 128
        for cand in (512, 256, 128):
            if total % cand == 0 and total // cand >= 8:
                lanes = cand
                break
    assert lanes % 128 == 0

    padded_total = _round_up(max(total, 1), lanes)
    rows2d = padded_total // lanes
    if rows2d < 8:
        rows2d = 8
        padded_total = rows2d * lanes
    pad = padded_total - total

    # Flatten (free).  Padding (only when total isn't a multiple of lanes, or
    # for tiny inputs) uses (p=1, t=1), which yields exactly zero loss.
    flat_p = inputs.reshape(-1)
    flat_t = targets.reshape(-1)
    if pad:
        flat_p = jnp.concatenate([flat_p, jnp.ones((pad,), flat_p.dtype)])
        flat_t = jnp.concatenate([flat_t, jnp.ones((pad,), flat_t.dtype)])
    p2d = flat_p.reshape(rows2d, lanes)
    t2d = flat_t.reshape(rows2d, lanes)

    if max_block_rows is None:
        max_block_rows = max(8, int(target_block_bytes) // (lanes * in_itemsize))
    max_block_rows = max(8, _round_up(int(max_block_rows), 8))
    rows_floor8 = (rows2d // 8) * 8  # >= 8 by construction

    def _pick_block_rows(target_rows):
        br = min(max_block_rows, _round_up(max(target_rows, 1), 8), rows_floor8)
        return max(8, (br // 8) * 8)

    def _vmem_limit(bytes_needed):
        return int(min(bytes_needed + (16 << 20), 64 << 20))

    if reduction in ('mean', 'sum'):
        num_partials = _guess_num_tensorcores() if rows2d >= 16 else 1
        block_rows = _pick_block_rows(_cdiv(rows2d, num_partials))
        nblocks_total = _cdiv(rows2d, block_rows)
        num_partials = max(1, min(num_partials, nblocks_total))
        inner = _cdiv(nblocks_total, num_partials)
        coverage = num_partials * inner * block_rows
        need_mask = coverage != rows2d
        last_block = nblocks_total - 1

        kernel = functools.partial(
            _focal_reduce_kernel, gamma=gamma, alpha=alpha,
            binary_targets=binary_targets, inner=inner, valid_rows=rows2d,
            need_mask=need_mask)

        def in_map(p, i):
            # Clamp so an over-rounded last partial never points a block
            # fully outside the array; the in-kernel mask (which uses the
            # unclamped offset) zeroes its contribution.
            return (jnp.minimum(p * inner + i, last_block), 0)

        block_bytes = block_rows * lanes * in_itemsize
        vmem_needed = 2 * 2 * block_bytes + 3 * 8 * lanes * 4

        partials = pl.pallas_call(
            kernel,
            out_shape=jax.ShapeDtypeStruct((num_partials * 8, lanes),
                                           jnp.float32),
            grid_spec=pltpu.PrefetchScalarGridSpec(
                num_scalar_prefetch=0,
                grid=(num_partials, inner),
                in_specs=[
                    pl.BlockSpec((block_rows, lanes), in_map),
                    pl.BlockSpec((block_rows, lanes), in_map),
                ],
                out_specs=pl.BlockSpec((8, lanes), lambda p, i: (p, 0)),
                scratch_shapes=[pltpu.VMEM((8, lanes), jnp.float32)],
            ),
            compiler_params=pltpu.CompilerParams(
                dimension_semantics=("parallel", "arbitrary"),
                vmem_limit_bytes=_vmem_limit(vmem_needed)),
        )(p2d, t2d)

        total_loss = jnp.sum(partials)
        if reduction == 'mean':
            total_loss = total_loss / total
        return total_loss

    # reduction == 'none'
    block_rows = _pick_block_rows(rows2d)
    nblocks = _cdiv(rows2d, block_rows)
    out_dtype = inputs.dtype
    out_itemsize = jnp.dtype(out_dtype).itemsize
    vmem_needed = (2 * 2 * block_rows * lanes * in_itemsize
                   + 2 * block_rows * lanes * out_itemsize)

    kernel = functools.partial(_focal_none_kernel, gamma=gamma, alpha=alpha,
                               binary_targets=binary_targets)
    out2d = pl.pallas_call(
        kernel,
        out_shape=jax.ShapeDtypeStruct((rows2d, lanes), out_dtype),
        grid_spec=pltpu.PrefetchScalarGridSpec(
            num_scalar_prefetch=0,
            grid=(nblocks,),
            in_specs=[
                pl.BlockSpec((block_rows, lanes), lambda i: (i, 0)),
                pl.BlockSpec((block_rows, lanes), lambda i: (i, 0)),
            ],
            out_specs=pl.BlockSpec((block_rows, lanes), lambda i: (i, 0)),
        ),
        compiler_params=pltpu.CompilerParams(
            dimension_semantics=("parallel",),
            vmem_limit_bytes=_vmem_limit(vmem_needed)),
    )(p2d, t2d)

    flat_out = out2d.reshape(-1)
    if pad:
        flat_out = flat_out[:total]
    return flat_out.reshape(inputs.shape)


def focal_loss_ref(inputs, targets, gamma=2.0, alpha=None, reduction='mean'):
    """Pure-JAX reference for correctness checking."""
    p = inputs.astype(jnp.float32)
    t = targets.astype(jnp.float32)
    log_p = jnp.maximum(jnp.log(p), -100.0)
    log_1mp = jnp.maximum(jnp.log(1.0 - p), -100.0)
    bce = -(t * log_p + (1.0 - t) * log_1mp)
    pt = jnp.exp(-bce)
    focal = jnp.power(1.0 - pt, gamma) * bce
    if alpha is not None:
        focal = alpha * focal
    if reduction == 'mean':
        return focal.mean()
    if reduction == 'sum':
        return focal.sum()
    return focal


if __name__ == "__main__":
    key = jax.random.PRNGKey(0)
    k1, k2, k3, k4 = jax.random.split(key, 4)

    # Shape implied by the module: (batch, num_principle_classes) probabilities.
    N, C = 16, 128
    inputs = jax.nn.sigmoid(jax.random.normal(k1, (N, C), dtype=jnp.float32))
    targets = (jax.random.uniform(k2, (N, C)) > 0.5).astype(jnp.float32)

    out = jax.block_until_ready(
        focal_loss(inputs, targets, gamma=2.0, alpha=None, reduction='mean'))
    ref = focal_loss_ref(inputs, targets, gamma=2.0, alpha=None,
                         reduction='mean')
    assert jnp.allclose(out, ref, rtol=1e-5, atol=1e-5), (out, ref)

    # Binary-target fast path (1 transcendental / element; v7x EUP relief).
    out_b = jax.block_until_ready(
        focal_loss(inputs, targets, gamma=2.0, alpha=None, reduction='mean',
                   binary_targets=True))
    assert jnp.allclose(out_b, ref, rtol=1e-4, atol=1e-5), (out_b, ref)

    # Ragged shape: exercises the minimal pad-to-128 path, multi-block grid,
    # the masked (P, inner) reduction split with index clamping and the
    # reshape-fold accumulator, using small tiles so all code paths run.
    N2, C2 = 300, 37
    inputs2 = jax.nn.sigmoid(jax.random.normal(k3, (N2, C2), dtype=jnp.float32))
    targets2 = (jax.random.uniform(k4, (N2, C2)) > 0.5).astype(jnp.float32)

    for red in ('mean', 'sum', 'none'):
        got = jax.block_until_ready(
            focal_loss(inputs2, targets2, gamma=2.0, alpha=0.25, reduction=red,
                       lanes=128, max_block_rows=16))
        want = focal_loss_ref(inputs2, targets2, gamma=2.0, alpha=0.25,
                              reduction=red)
        assert jnp.allclose(got, want, rtol=1e-4, atol=1e-5), (red, got, want)

    print("KERNEL_OK")
</pallas_src>

<mosaic_0001>
module attributes {stable_mosaic.version = 11 : i64} {
  func.func @_focal_reduce_kernel(%arg0: i32, %arg1: i32, %arg2: memref<8x256xf32, #tpu.memory_space<vmem>>, %arg3: memref<8x256xf32, #tpu.memory_space<vmem>>, %arg4: memref<8x256xf32, #tpu.memory_space<vmem>>, %arg5: memref<8x256xf32, #tpu.memory_space<vmem>>) attributes {dimension_semantics = [#tpu.dimension_semantics<parallel>, #tpu.dimension_semantics<arbitrary>], iteration_bounds = array<i64: 1, 1>, scalar_prefetch = 0 : i64, scratch_operands = 1 : i64, tpu.core_type = #tpu.core_type<tc>, window_params = [{transform_indices = @transform_0, window_bounds = array<i64: 8, 256>}, {transform_indices = @transform_1, window_bounds = array<i64: 8, 256>}, {transform_indices = @transform_2, window_bounds = array<i64: 8, 256>}]} {
    %c0_i32 = arith.constant 0 : i32
    %0 = arith.cmpi eq, %arg1, %c0_i32 : i32
    %1 = arith.extui %0 : i1 to i32
    %c0_i32_0 = arith.constant 0 : i32
    %2 = arith.cmpi ne, %1, %c0_i32_0 : i32
    scf.if %2 {
      %cst_17 = arith.constant 0.000000e+00 : f32
      %35 = vector.broadcast %cst_17 : f32 to vector<8x256xf32>
      %c0_18 = arith.constant 0 : index
      %c0_19 = arith.constant 0 : index
      %36 = vector.load %arg5[%c0_18, %c0_19] : memref<8x256xf32, #tpu.memory_space<vmem>>, vector<8x256xf32>
      tpu.vector_store %arg5[%c0_18, %c0_19], %35 {strides = array<i32>} : memref<8x256xf32, #tpu.memory_space<vmem>>, vector<8x256xf32>,
    } else {
    }
    %c0 = arith.constant 0 : index
    %c0_1 = arith.constant 0 : index
    %3 = vector.load %arg2[%c0, %c0_1] : memref<8x256xf32, #tpu.memory_space<vmem>>, vector<8x256xf32>
    %c0_2 = arith.constant 0 : index
    %c0_3 = arith.constant 0 : index
    %4 = vector.load %arg3[%c0_2, %c0_3] : memref<8x256xf32, #tpu.memory_space<vmem>>, vector<8x256xf32>
    %5 = math.log %3 : vector<8x256xf32>
    %cst = arith.constant -1.000000e+02 : f32
    %6 = vector.broadcast %cst : f32 to vector<8x256xf32>
    %7 = arith.maximumf %5, %6 : vector<8x256xf32>
    %cst_4 = arith.constant 1.000000e+00 : f32
    %8 = vector.broadcast %cst_4 : f32 to vector<8x256xf32>
    %9 = arith.subf %8, %3 : vector<8x256xf32>
    %10 = math.log %9 : vector<8x256xf32>
    %cst_5 = arith.constant -1.000000e+02 : f32
    %11 = vector.broadcast %cst_5 : f32 to vector<8x256xf32>
    %12 = arith.maximumf %10, %11 : vector<8x256xf32>
    %13 = arith.mulf %4, %7 : vector<8x256xf32>
    %cst_6 = arith.constant 1.000000e+00 : f32
    %14 = vector.broadcast %cst_6 : f32 to vector<8x256xf32>
    %15 = arith.subf %14, %4 : vector<8x256xf32>
    %16 = arith.mulf %15, %12 : vector<8x256xf32>
    %17 = arith.addf %13, %16 : vector<8x256xf32>
    %cst_7 = arith.constant 0.000000e+00 : f32
    %18 = vector.broadcast %cst_7 : f32 to vector<8x256xf32>
    %19 = arith.subf %18, %17 : vector<8x256xf32>
    %cst_8 = arith.constant 0.000000e+00 : f32
    %20 = vector.broadcast %cst_8 : f32 to vector<8x256xf32>
    %21 = arith.subf %20, %19 : vector<8x256xf32>
    %22 = math.exp %21 : vector<8x256xf32>
    %cst_9 = arith.constant 1.000000e+00 : f32
    %23 = vector.broadcast %cst_9 : f32 to vector<8x256xf32>
    %24 = arith.subf %23, %22 : vector<8x256xf32>
    %25 = arith.mulf %24, %24 : vector<8x256xf32>
    %26 = arith.mulf %25, %19 : vector<8x256xf32>
    %c0_10 = arith.constant 0 : index
    %c0_11 = arith.constant 0 : index
    %27 = vector.load %arg5[%c0_10, %c0_11] : memref<8x256xf32, #tpu.memory_space<vmem>>, vector<8x256xf32>
    %28 = vector.shape_cast %26 : vector<8x256xf32> to vector<1x8x256xf32>
    %cst_12 = arith.constant dense<0.000000e+00> : vector<8x256xf32>
    %29 = vector.multi_reduction <add>, %28, %cst_12 [0] : vector<1x8x256xf32> to vector<8x256xf32>
    %30 = arith.addf %27, %29 : vector<8x256xf32>
    %c0_13 = arith.constant 0 : index
    %c0_14 = arith.constant 0 : index
    %31 = vector.load %arg5[%c0_13, %c0_14] : memref<8x256xf32, #tpu.memory_space<vmem>>, vector<8x256xf32>
    tpu.vector_store %arg5[%c0_13, %c0_14], %30 {strides = array<i32>} : memref<8x256xf32, #tpu.memory_space<vmem>>, vector<8x256xf32>,
    %c0_i32_15 = arith.constant 0 : i32
    %32 = arith.cmpi eq, %arg1, %c0_i32_15 : i32
    %33 = arith.extui %32 : i1 to i32
    %c0_i32_16 = arith.constant 0 : i32
    %34 = arith.cmpi ne, %33, %c0_i32_16 : i32
    scf.if %34 {
      %c0_17 = arith.constant 0 : index
      %c0_18 = arith.constant 0 : index
      %35 = vector.load %arg5[%c0_17, %c0_18] : memref<8x256xf32, #tpu.memory_space<vmem>>, vector<8x256xf32>
      %c0_19 = arith.constant 0 : index
      %c0_20 = arith.constant 0 : index
      %36 = vector.load %arg4[%c0_19, %c0_20] : memref<8x256xf32, #tpu.memory_space<vmem>>, vector<8x256xf32>
      tpu.vector_store %arg4[%c0_19, %c0_20], %35 {strides = array<i32>} : memref<8x256xf32, #tpu.memory_space<vmem>>, vector<8x256xf32>,
    } else {
    }
    return
  }
  func.func @transform_0(%arg0: i32, %arg1: i32) -> (i32, i32) {
    %c1_i32 = arith.constant 1 : i32
    %0 = arith.muli %arg0, %c1_i32 : i32
    %1 = arith.addi %0, %arg1 : i32
    %c0_i32 = arith.constant 0 : i32
    %2 = arith.minsi %1, %c0_i32 : i32
    %c0_i32_0 = arith.constant 0 : i32
    %c0_i32_1 = arith.constant 0 : i32
    return %2, %c0_i32_0 : i32, i32
  }
  func.func @transform_1(%arg0: i32, %arg1: i32) -> (i32, i32) {
    %c1_i32 = arith.constant 1 : i32
    %0 = arith.muli %arg0, %c1_i32 : i32
    %1 = arith.addi %0, %arg1 : i32
    %c0_i32 = arith.constant 0 : i32
    %2 = arith.minsi %1, %c0_i32 : i32
    %c0_i32_0 = arith.constant 0 : i32
    %c0_i32_1 = arith.constant 0 : i32
    return %2, %c0_i32_0 : i32, i32
  }
  func.func @transform_2(%arg0: i32, %arg1: i32) -> (i32, i32) {
    %c0_i32 = arith.constant 0 : i32
    %c0_i32_0 = arith.constant 0 : i32
    return %arg0, %c0_i32 : i32, i32
  }
}

</mosaic_0001>

<bundles_post_ra>
// kernel: tpu_custom_call.1
= control target key start
LH: loop header
LB: loop body
LE: loop exit
PB: predicated region body
PF: predicated region fallthrough
CT: control target
= control target key end

     0   :  { %7 = vsyncpa [#allocation4], 0  ;;  %s276_s0 = inlined_call_operand.hbm [shape: f32[8,256], index: 0, kind: input, shape index: {}]   ;;  %s277_s1 = inlined_call_operand.hbm [shape: f32[8,256], index: 1, kind: input, shape index: {}]   ;;  %s278_s2 = inlined_call_operand.hbm [shape: f32[8,256], index: 2, kind: output, shape index: {}]  }
   0x1   :  { %8 = vsyncpa [#allocation7], 0 }
   0x2   :  { %9 = vsyncpa [#allocation5], 0  ;;  %s222_s9 = smov [#allocation3]   ;;  %s223_s11 = smov [#allocation6]  }
   0x3   :  { %s22_s10 = sshll.u32 %s222_s9, 4  ;;  %s38_s12 = sshll.u32 %s223_s11, 4  ;;  %s23_s10 = int_to_ptr.vmem [resolvable:$true] %s22_s10  ;;  %s39_s12 = int_to_ptr.vmem [resolvable:$true] %s38_s12 }
   0x4   :  { %s150_s15 = scalar_lea.hbm %s276_s0, 256 }
   0x5   :  { %p151_p0 = scmp.ne.s32.totalorder %s276_s0, %s150_s15  ;;  %p154_p1 = scmp.lt.u32.totalorder %s150_s15, %s276_s0 }
   0x7   :  { %p156_p2 = pnand %p154_p1, %p151_p0 }
   0x9   :  { %159 = shalt.err (!%p156_p2)
}
   0xa   :  { %s160_s20 = scalar_lea.vmem %s23_s10, 256  ;;  %p165_p4 = scmp.lt.s32.totalorder %s23_s10, %s23_s10 }
   0xb   :  { %p161_p3 = scmp.ne.s32.totalorder %s23_s10, %s160_s20  ;;  %p166_p5 = scmp.lt.s32.totalorder %s160_s20, %s160_s20 }
   0xd   :  { %p167_p6 = por %p166_p5, %p165_p4 }
   0xf   :  { %p168_p7 = pnand %p167_p6, %p161_p3 }
  0x11   :  { %171 = shalt.err (!%p168_p7)
}
  0x12   :  { %25 = dma.hbm_to_vmem [thread:$0]  %s276_s0, 256, %s23_s10, [#allocation4]  }
  0x13   :  { %s172_s25 = scalar_lea.hbm %s277_s1, 256 }
  0x14   :  { %p173_p8 = scmp.ne.s32.totalorder %s277_s1, %s172_s25  ;;  %p176_p9 = scmp.lt.u32.totalorder %s172_s25, %s277_s1 }
  0x16   :  { %p178_p10 = pnand %p176_p9, %p173_p8 }
  0x18   :  { %181 = shalt.err (!%p178_p10)
}
  0x19   :  { %s182_s30 = scalar_lea.vmem %s39_s12, 256  ;;  %p187_p12 = scmp.lt.s32.totalorder %s39_s12, %s39_s12 }
  0x1a   :  { %p183_p11 = scmp.ne.s32.totalorder %s39_s12, %s182_s30  ;;  %p188_p13 = scmp.lt.s32.totalorder %s182_s30, %s182_s30 }
  0x1c   :  { %p189_p0 = por %p188_p13, %p187_p12 }
  0x1e   :  { %p190_p1 = pnand %p189_p0, %p183_p11 }
  0x20   :  { %193 = shalt.err (!%p190_p1)
}
  0x21   :  { %41 = dma.hbm_to_vmem [thread:$0]  %s277_s1, 256, %s39_s12, [#allocation7]  }
  0x22   :  { %216 = dma.done.wait [#allocation4], 256  }
  0x23   :  { %217 = vsyncadd [#allocation4], 4294967040 }
  0x24   :  { %218 = dma.done.wait [#allocation7], 256  }
  0x25   :  { %219 = vsyncadd [#allocation7], 4294967040  ;;  %v60_v0 = vld [vmem:[#allocation3] sm:$0xff]  ;;  %v61_v1 = vld [vmem:[#allocation3 + $0x8] sm:$0xff]  ;;  %s224_s1 = smov [#allocation8]  }
  0x26   :  { %138 = vlog2.f32 %v60_v0  ;;  %v70_v2 = vsub.f32 1.0, %v60_v0  ;;  %v71_v3 = vsub.f32 1.0, %v61_v1  ;;  %v62_v5 = vld [vmem:[#allocation6] sm:$0xff]  ;;  %v63_v8 = vld [vmem:[#allocation6 + $0x8] sm:$0xff]  ;;  %s121_s4 = sshll.u32 %s224_s1, 4  ;;  %s122_s4 = int_to_ptr.vmem [resolvable:$true] %s121_s4 }
  0x27   :  { %140 = vlog2.f32 %v61_v1  ;;  %v80_v14 = vsub.f32 1.0, %v62_v5  ;;  %v81_v17 = vsub.f32 1.0, %v63_v8  ;;  %s194_s5 = scalar_lea.vmem %s122_s4, 256  ;;  %p199_p3 = scmp.lt.s32.totalorder %s122_s4, %s122_s4 }
  0x28   :  { %142 = vlog2.f32 %v70_v2  ;;  %p195_p2 = scmp.ne.s32.totalorder %s122_s4, %s194_s5  ;;  %p200_p4 = scmp.lt.s32.totalorder %s194_s5, %s194_s5 }
  0x29   :  { %144 = vlog2.f32 %v71_v3 }
  0x2a   :  { %p201_p5 = por %p200_p4, %p199_p3 }
  0x2c   :  { %p202_p6 = pnand %p201_p5, %p195_p2 }
  0x30   :  { %v139_v4 = vpop.eup %138 }
  0x31   :  { %v141_v6 = vpop.eup %140  ;;  %v65_v7 = vmul.f32 0.6931472, %v139_v4 }
  0x32   :  { %v143_v9 = vpop.eup %142  ;;  %v67_v10 = vmul.f32 0.6931472, %v141_v6 }
  0x33   :  { %v145_v11 = vpop.eup %144  ;;  %v68_v12 = vmax.f32 %v65_v7, -100.0  ;;  %v73_v13 = vmul.f32 0.6931472, %v143_v9 }
  0x34   :  { %v69_v15 = vmax.f32 %v67_v10, -100.0  ;;  %v75_v16 = vmul.f32 0.6931472, %v145_v11 }
  0x35   :  { %v76_v18 = vmax.f32 %v73_v13, -100.0  ;;  %v78_v19 = vmul.f32 %v68_v12, %v62_v5 }
  0x36   :  { %v77_v20 = vmax.f32 %v75_v16, -100.0  ;;  %v79_v21 = vmul.f32 %v69_v15, %v63_v8 }
  0x37   :  { %v82_v22 = vmul.f32 %v80_v14, %v76_v18 }
  0x38   :  { %v83_v23 = vmul.f32 %v81_v17, %v77_v20 }
  0x39   :  { %v84_v24 = vadd.f32 %v82_v22, %v78_v19 }
  0x3a   :  { %v85_v25 = vadd.f32 %v83_v23, %v79_v21 }
  0x3b   :  { %v86_v26 = vsub.f32 0.0, %v84_v24 }
  0x3c   :  { %v87_v27 = vsub.f32 0.0, %v85_v25 }
  0x3d   :  { %v88_v28 = vsub.f32 0.0, %v86_v26 }
  0x3e   :  { %v89_v29 = vsub.f32 0.0, %v87_v27 }
  0x3f   :  { %v90_v30 = vmul.f32 1.442695, %v88_v28 }
  0x40   :  { %v92_v31 = vmul.f32 1.442695, %v89_v29 }
  0x41   :  { %146 = vpow2.f32 %v90_v30 }
  0x42   :  { %148 = vpow2.f32 %v92_v31 }
  0x4b   :  { %v147_v32 = vpop.eup %146 }
  0x4c   :  { %v149_v33 = vpop.eup %148  ;;  %v94_v34 = vsub.f32 1.0, %v147_v32 }
  0x4d   :  { %v95_v35 = vsub.f32 1.0, %v149_v33 }
  0x4e   :  { %v96_v36 = vmul.f32 %v94_v34, %v94_v34 }
  0x4f   :  { %v97_v37 = vmul.f32 %v95_v35, %v95_v35 }
  0x50   :  { %v98_v38 = vmul.f32 %v96_v36, %v86_v26 }
  0x51   :  { %v99_v39 = vmul.f32 %v97_v37, %v87_v27 }
  0x52   :  { %113 = vst [vmem:[#allocation8] sm:$0xff] %v98_v38 }
  0x53   :  { %114 = vst [vmem:[#allocation8 + $0x8] sm:$0xff] %v99_v39 }
  0x54   :  { %205 = shalt.err (!%p202_p6)
}
  0x55   :  { %s206_s8 = scalar_lea.hbm %s278_s2, 256 }
  0x56   :  { %p207_p7 = scmp.ne.s32.totalorder %s278_s2, %s206_s8  ;;  %p210_p8 = scmp.lt.u32.totalorder %s206_s8, %s278_s2 }
  0x58   :  { %p212_p9 = pnand %p210_p8, %p207_p7 }
  0x5a   :  { %215 = shalt.err (!%p212_p9)
}
  0x5b   :  { %124 = dma.vmem_to_hbm [thread:$0]  %s122_s4, 256, %s278_s2, [#allocation5]  }
  0x5c   :  { %220 = dma.done.wait [#allocation5], 256  }
  0x5d   :  { %221 = vsyncadd [#allocation5], 4294967040 }
  0x5e   :  { %128 = vsyncpa [#allocation4], 1 }
  0x5f   :  { %129 = vsyncpa [#allocation7], 1 }
  0x60   :  { %130 = vsyncpa [#allocation5], 1 }

</bundles_post_ra>
